<compile_context>
chip_gen: v6e
topology: v6e:2x2x1
jax: 0.10.0
libtpu: 0.0.40
codegen_flags: <defaults>
</compile_context>

<pallas_src>
import jax
import jax.numpy as jnp
from jax.experimental import pallas as pl
from jax.experimental.pallas import tpu as pltpu


def _cnn_kernel(x_ref, w1_ref, b1_ref, w2_ref, b2_ref, o_ref):
    # x_ref:  (1, C_in,  T) pixel tile (channel-major, pixels in lanes)
    # w1_ref: (C_mid, C_in), b1_ref: (C_mid, 1)
    # w2_ref: (C_out, C_mid), b2_ref: (C_out, 1)
    # o_ref:  (1, C_out, T)
    x = x_ref[0]                                                  # (C_in, T)
    h = jnp.dot(w1_ref[...], x, preferred_element_type=jnp.float32)
    h = jnp.maximum(h + b1_ref[...], 0.0)                         # ReLU, (C_mid, T)
    y = jnp.dot(w2_ref[...], h, preferred_element_type=jnp.float32)
    y = y + b2_ref[...]                                           # (C_out, T)
    o_ref[0] = y.astype(o_ref.dtype)


def cnn_forward(x_nchw, w1, b1, w2, b2, *, max_tile_pix=4096):
    """Fused 1x1-conv -> ReLU -> 1x1-conv, channel-major.

    x_nchw: (N, C_in, H, W) float32
    w1:     (C_mid, C_in)   (PyTorch conv1 weight, 1x1 kernel squeezed)
    b1:     (C_mid,)
    w2:     (C_out, C_mid)  (PyTorch conv2 weight, 1x1 kernel squeezed)
    b2:     (C_out,)
    returns (N, C_out, H, W) float32
    """
    N, C_in, H, W = x_nchw.shape
    C_mid = w1.shape[0]
    C_out = w2.shape[0]
    S = H * W

    # Free reshape (no transpose): keep channel-major, pixels in the lane dim.
    x3 = x_nchw.reshape(N, C_in, S)

    # Pixel tile: full spatial extent if it fits (block dim == full array dim
    # is always legal), else the largest multiple of 128 under the cap.
    if S <= max_tile_pix:
        tile_pix = S
    else:
        tile_pix = max(128, (max_tile_pix // 128) * 128)
    n_s = pl.cdiv(S, tile_pix)  # partial tail block handled by Pallas padding

    b1_2d = b1.reshape(C_mid, 1)
    b2_2d = b2.reshape(C_out, 1)

    itemsize = jnp.dtype(x_nchw.dtype).itemsize
    flops = 2 * N * S * (C_in * C_mid + C_mid * C_out)
    bytes_accessed = itemsize * (
        N * S * (C_in + C_out) + C_mid * C_in + C_out * C_mid + C_mid + C_out
    )

    out3 = pl.pallas_call(
        _cnn_kernel,
        out_shape=jax.ShapeDtypeStruct((N, C_out, S), x_nchw.dtype),
        grid_spec=pltpu.PrefetchScalarGridSpec(
            num_scalar_prefetch=0,
            grid=(N, n_s),
            in_specs=[
                pl.BlockSpec((1, C_in, tile_pix), lambda n, s: (n, 0, s)),
                pl.BlockSpec((C_mid, C_in), lambda n, s: (0, 0)),   # resident
                pl.BlockSpec((C_mid, 1), lambda n, s: (0, 0)),      # resident
                pl.BlockSpec((C_out, C_mid), lambda n, s: (0, 0)),  # resident
                pl.BlockSpec((C_out, 1), lambda n, s: (0, 0)),      # resident
            ],
            out_specs=pl.BlockSpec((1, C_out, tile_pix), lambda n, s: (n, 0, s)),
        ),
        compiler_params=pltpu.CompilerParams(
            dimension_semantics=("parallel", "parallel"),
        ),
        cost_estimate=pl.CostEstimate(
            flops=flops, transcendentals=0, bytes_accessed=bytes_accessed
        ),
    )(x3, w1, b1_2d, w2, b2_2d)

    # Free reshape back to NCHW (already channel-major).
    return out3.reshape(N, C_out, H, W)


def make_params(key, in_channels, out_channels, dtype=jnp.float32):
    """Deterministic synthetic params matching nn.Conv2d(in, 2*in, 1) and
    nn.Conv2d(2*in, out, 1), in native PyTorch (out, in) layout (1x1 squeezed)."""
    mid = in_channels * 2
    k1, k2, k3, k4 = jax.random.split(key, 4)
    w1 = jax.random.normal(k1, (mid, in_channels), dtype) * 0.1
    b1 = jax.random.normal(k2, (mid,), dtype) * 0.1
    w2 = jax.random.normal(k3, (out_channels, mid), dtype) * 0.1
    b2 = jax.random.normal(k4, (out_channels,), dtype) * 0.1
    return w1, b1, w2, b2


def cnn_reference(x_nchw, w1, b1, w2, b2):
    # Pure-JAX reference of the same math (channel-major) for a sanity check.
    N, C_in, H, W = x_nchw.shape
    x3 = x_nchw.reshape(N, C_in, H * W)
    h = jnp.einsum("mc,ncs->nms", w1, x3) + b1[None, :, None]
    h = jnp.maximum(h, 0.0)
    y = jnp.einsum("om,nms->nos", w2, h) + b2[None, :, None]
    return y.reshape(N, -1, H, W)


if __name__ == "__main__":
    in_channels = 4
    out_channels = 8
    N, H, W = 2, 16, 16

    key = jax.random.PRNGKey(0)
    kx, kp = jax.random.split(key)
    x = jax.random.normal(kx, (N, in_channels, H, W), jnp.float32)
    w1, b1, w2, b2 = make_params(kp, in_channels, out_channels)

    out = cnn_forward(x, w1, b1, w2, b2)
    out = jax.block_until_ready(out)

    ref = cnn_reference(x, w1, b1, w2, b2)
    assert out.shape == (N, out_channels, H, W), out.shape
    assert jnp.allclose(out, ref, atol=1e-5, rtol=1e-5), "mismatch vs reference"

    print("KERNEL_OK")
</pallas_src>

<mosaic_0001>
module attributes {stable_mosaic.version = 11 : i64} {
  func.func @_cnn_kernel(%arg0: i32, %arg1: i32, %arg2: memref<1x4x256xf32, #tpu.memory_space<vmem>>, %arg3: memref<8x4xf32, #tpu.memory_space<vmem>>, %arg4: memref<8x1xf32, #tpu.memory_space<vmem>>, %arg5: memref<8x8xf32, #tpu.memory_space<vmem>>, %arg6: memref<8x1xf32, #tpu.memory_space<vmem>>, %arg7: memref<1x8x256xf32, #tpu.memory_space<vmem>>) attributes {dimension_semantics = [#tpu.dimension_semantics<parallel>, #tpu.dimension_semantics<parallel>], iteration_bounds = array<i64: 2, 1>, scalar_prefetch = 0 : i64, scratch_operands = 0 : i64, tpu.core_type = #tpu.core_type<tc>, window_params = [{transform_indices = @transform_0, window_bounds = array<i64: 1, 4, 256>}, {pipeline_mode = #tpu.pipeline_mode<synchronous>, transform_indices = @transform_1, window_bounds = array<i64: 8, 4>}, {pipeline_mode = #tpu.pipeline_mode<synchronous>, transform_indices = @transform_2, window_bounds = array<i64: 8, 1>}, {pipeline_mode = #tpu.pipeline_mode<synchronous>, transform_indices = @transform_3, window_bounds = array<i64: 8, 8>}, {pipeline_mode = #tpu.pipeline_mode<synchronous>, transform_indices = @transform_4, window_bounds = array<i64: 8, 1>}, {transform_indices = @transform_5, window_bounds = array<i64: 1, 8, 256>}]} {
    %c0 = arith.constant 0 : index
    %c0_0 = arith.constant 0 : index
    %c0_1 = arith.constant 0 : index
    %0 = vector.load %arg2[%c0, %c0_0, %c0_1] : memref<1x4x256xf32, #tpu.memory_space<vmem>>, vector<1x4x256xf32>
    %1 = vector.shape_cast %0 : vector<1x4x256xf32> to vector<4x256xf32>
    %c0_2 = arith.constant 0 : index
    %c0_3 = arith.constant 0 : index
    %2 = vector.load %arg3[%c0_2, %c0_3] : memref<8x4xf32, #tpu.memory_space<vmem>>, vector<8x4xf32>
    %cst = arith.constant dense<0.000000e+00> : vector<8x256xf32>
    %3 = tpu.matmul %2, %1, %cst {dimension_numbers = #tpu.dot_dimension_numbers<[1], [0], [0], [1], [0, 0, 1, 1], [], []>} : vector<8x4xf32>, vector<4x256xf32>, vector<8x256xf32> -> vector<8x256xf32>
    %c0_4 = arith.constant 0 : index
    %c0_5 = arith.constant 0 : index
    %4 = vector.load %arg4[%c0_4, %c0_5] : memref<8x1xf32, #tpu.memory_space<vmem>>, vector<8x1xf32>
    %5 = vector.broadcast %4 : vector<8x1xf32> to vector<8x256xf32>
    %6 = arith.addf %3, %5 : vector<8x256xf32>
    %cst_6 = arith.constant 0.000000e+00 : f32
    %7 = vector.broadcast %cst_6 : f32 to vector<8x256xf32>
    %8 = arith.maximumf %6, %7 : vector<8x256xf32>
    %c0_7 = arith.constant 0 : index
    %c0_8 = arith.constant 0 : index
    %9 = vector.load %arg5[%c0_7, %c0_8] : memref<8x8xf32, #tpu.memory_space<vmem>>, vector<8x8xf32>
    %cst_9 = arith.constant dense<0.000000e+00> : vector<8x256xf32>
    %10 = tpu.matmul %9, %8, %cst_9 {dimension_numbers = #tpu.dot_dimension_numbers<[1], [0], [0], [1], [0, 0, 1, 1], [], []>} : vector<8x8xf32>, vector<8x256xf32>, vector<8x256xf32> -> vector<8x256xf32>
    %c0_10 = arith.constant 0 : index
    %c0_11 = arith.constant 0 : index
    %11 = vector.load %arg6[%c0_10, %c0_11] : memref<8x1xf32, #tpu.memory_space<vmem>>, vector<8x1xf32>
    %12 = vector.broadcast %11 : vector<8x1xf32> to vector<8x256xf32>
    %13 = arith.addf %10, %12 : vector<8x256xf32>
    %c0_12 = arith.constant 0 : index
    %c0_13 = arith.constant 0 : index
    %c0_14 = arith.constant 0 : index
    %14 = vector.load %arg7[%c0_12, %c0_13, %c0_14] : memref<1x8x256xf32, #tpu.memory_space<vmem>>, vector<1x8x256xf32>
    %15 = vector.shape_cast %14 : vector<1x8x256xf32> to vector<8x256xf32>
    %16 = vector.shape_cast %13 : vector<8x256xf32> to vector<1x8x256xf32>
    tpu.vector_store %arg7[%c0_12, %c0_13, %c0_14], %16 {strides = array<i32>} : memref<1x8x256xf32, #tpu.memory_space<vmem>>, vector<1x8x256xf32>,
    return
  }
  func.func @transform_0(%arg0: i32, %arg1: i32) -> (i32, i32, i32) {
    %c0_i32 = arith.constant 0 : i32
    %c0_i32_0 = arith.constant 0 : i32
    return %arg0, %c0_i32, %arg1 : i32, i32, i32
  }
  func.func @transform_1(%arg0: i32, %arg1: i32) -> (i32, i32) {
    %c0_i32 = arith.constant 0 : i32
    %c0_i32_0 = arith.constant 0 : i32
    %c0_i32_1 = arith.constant 0 : i32
    return %c0_i32, %c0_i32_0 : i32, i32
  }
  func.func @transform_2(%arg0: i32, %arg1: i32) -> (i32, i32) {
    %c0_i32 = arith.constant 0 : i32
    %c0_i32_0 = arith.constant 0 : i32
    %c0_i32_1 = arith.constant 0 : i32
    return %c0_i32, %c0_i32_0 : i32, i32
  }
  func.func @transform_3(%arg0: i32, %arg1: i32) -> (i32, i32) {
    %c0_i32 = arith.constant 0 : i32
    %c0_i32_0 = arith.constant 0 : i32
    %c0_i32_1 = arith.constant 0 : i32
    return %c0_i32, %c0_i32_0 : i32, i32
  }
  func.func @transform_4(%arg0: i32, %arg1: i32) -> (i32, i32) {
    %c0_i32 = arith.constant 0 : i32
    %c0_i32_0 = arith.constant 0 : i32
    %c0_i32_1 = arith.constant 0 : i32
    return %c0_i32, %c0_i32_0 : i32, i32
  }
  func.func @transform_5(%arg0: i32, %arg1: i32) -> (i32, i32, i32) {
    %c0_i32 = arith.constant 0 : i32
    %c0_i32_0 = arith.constant 0 : i32
    return %arg0, %c0_i32, %arg1 : i32, i32, i32
  }
}

</mosaic_0001>

<bundles_post_ra>
// kernel: tpu_custom_call.1
= control target key start
LH: loop header
LB: loop body
LE: loop exit
PB: predicated region body
PF: predicated region fallthrough
CT: control target
= control target key end

     0   :  { %10 = vsyncpa [#allocation3], 0  ;;  %s823_s0 = inlined_call_operand.vmem [shape: f32[2,4,256], index: 0, kind: input, shape index: {}]   ;;  %s824_s1 = inlined_call_operand.vmem [shape: f32[8,4], index: 1, kind: input, shape index: {}]   ;;  %s825_s2 = inlined_call_operand.vmem [shape: f32[8,1], index: 2, kind: input, shape index: {}]   ;;  %s826_s3 = inlined_call_operand.vmem [shape: f32[8,8], index: 3, kind: input, shape index: {}]   ;;  %s827_s4 = inlined_call_operand.vmem [shape: f32[8,1], index: 4, kind: input, shape index: {}]   ;;  %s828_s5 = inlined_call_operand.hbm [shape: f32[2,8,256], index: 5, kind: output, shape index: {}]  }
   0x1   :  { %12 = vsyncpa [#allocation3 + $0x1], 0  ;;  %s712_s18 = smov 0   ;;  %s714_s19 = smov 0  }
   0x2   :  { %s716_s20 = smov 0   ;;  %s718_s21 = smov 0  }
   0x3   :  { %s720_s22 = smov 0   ;;  %s722_s23 = smov 0  }
   0x4 LB: > { %s523_s24 = sadd.s32 4294967295, %s677_s23   ;;  %s524_s25 = sadd.s32 4294967294, %s677_s23   ;;  %s677_s23 = sphi %s722_s23, %s18_s23   ;;  %s673_s22 = sphi %s720_s22, %s835_s22   ;;  %s669_s21 = sphi %s718_s21, %s834_s21   ;;  %s665_s20 = sphi %s716_s20, %s833_s20   ;;  %s661_s19 = sphi %s714_s19, %s832_s19   ;;  %s657_s18 = sphi %s712_s18, %s831_s18  }
   0x5   : > { %s30_s26 = sadd.s32 1, %s673_s22  ;;  %s151_s27 = sadd.s32 1, %s665_s20 }
   0x6   : > { %p32_p0 = scmp.ge.s32.totalorder %s30_s26, 2  ;;  %p161_p1 = scmp.ne.s32.totalorder %s665_s20, %s661_s19 }
   0x7   : > { %p162_p2 = scmp.eq.s32.totalorder %s523_s24, 1  ;;  %p167_p3 = scmp.ne.s32.totalorder %s661_s19, %s657_s18 }
   0x8   : > { %s837_s26 = smov (%p32_p0, %s30_s26), 0  ;;  %p168_p5 = scmp.eq.s32.totalorder %s524_s25, 1 }
   0x9   : > { %p752_p4 = por %p162_p2, %p161_p1  ;;  %s146_s29 = ssub.s32 %s673_s22, %s837_s26 }
   0xa   : > { %p527_p6 = scmp.ge.s32.totalorder %s677_s23, 1  ;;  %p149_p7 = scmp.eq.s32.totalorder %s146_s29, 0 }
   0xb   : > { %p759_p8 = por %p168_p5, %p167_p3  ;;  %p211_p9 = scmp.lt.s32.totalorder %s677_s23, 3 }
   0xc   : > { %s765_s6 = scalar_select %p149_p7, %s665_s20, %s151_s27  }
   0xd   : > { %p212_p10 = pnand %p527_p6, %p211_p9 }
   0xe   : > { %p244_p11 = scmp.lt.s32.totalorder (!%p212_p10), %s669_s21, 1  ;;  %s240_s27 = sand.u32 (!%p212_p10), 1, %s661_s19  }
   0xf   : > { %215 = sbr.rel (%p212_p10) target bundleno = 440 (0x1b8), region = 40  ;;  %s528_s29 = sshll.u32 (!%p212_p10), %s240_s27, 4 }
  0x10   : > { %s541_s7 = sshll.u32 (!%p212_p10), %s669_s21, 8  ;;  %s242_s8 = scalar_lea.vmem (!%p212_p10), [#allocation2], %s528_s29 }
  0x11   : > { %s431_s13 = scalar_lea.sflag (!%p212_p10), [#allocation3], %s240_s27 }
  0x14   : > { %v679_v0 = vmov 0.0   ;;  %v680_v1 = vmov 0   ;;  %v256_v2 = vld [vmem:[%s825_s2] sm:$0xff]  ;;  %s245_s9 = scalar_select %p244_p11, %s669_s21, 1  ;;  %vm268_vm0 = vcmask 1043456   ;;  %vm264_vm1 = vcmask 31744  }
  0x15   : > { %337 = vmatprep.mubr.f32.mxu0 %v679_v0  ;;  %599 = vset.pattern.permute.xlu0 %v680_v1  ;;  %v347_v3 = vld [vmem:[%s827_s4] sm:$0xff]  ;;  %vm353_vm2 = vcmask 64512  }
  0x16   : > { %259 = vperm.xlu0 %599, %v256_v2   ;;  %421 = vmatprep.mubr.f32.mxu1 %v679_v0  ;;  %s540_s12 = sshll.u32 %s245_s9, 3  ;;  %v255_v6 = vld [vmem:[%s824_s1] sm:$0xff]  ;;  %s447_s9 = sshll.u32 %s242_s8, 4  ;;  %s448_s9 = int_to_ptr.vmem [resolvable:$true] %s447_s9 }
  0x17   : > { %s251_s15 = scalar_lea.vmem %s823_s0, %s540_s12  ;;  %v346_v14 = vld [vmem:[%s826_s3] sm:$0xff]  ;;  %s445_s12 = scalar_lea.hbm %s828_s5, %s541_s7 }
  0x18   : > { %v254_v4 = vld [vmem:[%s251_s15] sm:$0xff]  ;;  %s601_s14 = scalar_lea.vmem %s448_s9, 256  ;;  %s681_s15 = smov [#allocation2]  }
  0x19   : > { %v263_v5 = vcombine.high %v254_v4, %v254_v4  ;;  %p602_p12 = scmp.ne.s32.totalorder %s448_s9, %s601_s14  ;;  %s605_s21 = sshll.u32 %s681_s15, 4  ;;  %s606_s21 = int_to_ptr.vmem [resolvable:$false] %s605_s21 }
  0x1a   : > { %350 = vperm.xlu0 %599, %v347_v3   ;;  %s607_s16 = scalar_lea.vmem %s606_s21, 512  ;;  %p608_p1 = scmp.lt.s32.totalorder %s448_s9, %s606_s21 }
  0x1b   : > { %531 = vmatprep.subr.msk.mxu0 %vm268_vm0, %v263_v5  ;;  %p603_p13 = pnand %p602_p12, %p752_p4  ;;  %p609_p2 = scmp.lt.s32.totalorder %s607_s16, %s601_s14 }
  0x1c   : > { %532 = vmatpush1.msk.msra.mxu0 %vm268_vm0, %v254_v4 }
  0x1d   : > { %533 = vmatmul.mubr.msk.f32.vlgmr.msra.gmra.mxu0 %vm264_vm1, %v255_v6  ;;  %p604_p0 = pneg %p603_p13  ;;  %p610_p3 = por %p609_p2, %p608_p1 }
  0x1f   : > { %p611_p5 = pnand %p610_p3, %p604_p0 }
  0x91   : > { %v260_v8 = vpop.permute.xlu0 %259 }
  0x95   : > { %v351_v15 = vpop.permute.xlu0 %350 }
  0xdd   : > { %v339_v7 = vpop.f32.mrf.mxu0 }
  0xde   : > { %v340_v9 = vadd.f32 %v339_v7, %v260_v8 }
  0xdf   : > { %v341_v10 = vpop.f32.mrf.mxu0 }
  0xe0   : > { %v342_v11 = vadd.f32 %v341_v10, %v260_v8  ;;  %v344_v13 = vmax.f32 %v340_v9, 0.0 }
  0xe2   : > { %v345_v12 = vmax.f32 %v342_v11, 0.0 }
  0xe4   : > { %387 = vmatprep.subr.mxu1 %v345_v12 }
  0xe5   : > { %388 = vmatpush1.msra.mxu1 %v344_v13 }
  0xe6   : > { %534 = vmatmul.mubr.msk.f32.vlgmr.msra.gmra.mxu1 %vm353_vm2, %v346_v14 }
 0x1a6   : > { %v423_v16 = vpop.f32.mrf.mxu1 }
 0x1a7   : > { %v424_v17 = vadd.f32 %v423_v16, %v351_v15 }
 0x1a8   : > { %v425_v18 = vpop.f32.mrf.mxu1 }
 0x1a9   : > { %428 = vst [vmem:[%s242_s8] sm:$0xff] %v424_v17  ;;  %v426_v19 = vadd.f32 %v425_v18, %v351_v15 }
 0x1ab   : > { %429 = vst [vmem:[%s242_s8 + $0x8] sm:$0xff] %v426_v19 }
 0x1ac   : > { %614 = shalt.err (!%p611_p5)
}
 0x1ad   : > { %s615_s17 = scalar_lea.hbm %s445_s12, 256  ;;  %s619_s27 = scalar_lea.hbm %s828_s5, 512 }
 0x1ae   : > { %p616_p6 = scmp.ne.s32.totalorder %s445_s12, %s615_s17  ;;  %p620_p10 = scmp.lt.s32.totalorder %s445_s12, %s828_s5 }
 0x1af   : > { %p621_p11 = scmp.lt.s32.totalorder %s619_s27, %s615_s17 }
 0x1b0   : > { %p617_p7 = pnand %p616_p6, %p752_p4 }
 0x1b1   : > { %p622_p12 = por %p621_p11, %p620_p10 }
 0x1b2   : > { %p618_p9 = pneg %p617_p7 }
 0x1b4   : > { %p623_p13 = pnand %p622_p12, %p618_p9 }
 0x1b6   : > { %626 = shalt.err (!%p623_p13)
}
 0x1b7   : > { %542 = dma.vmem_to_hbm [thread:$0]  (%p752_p4), %s448_s9, 256, %s445_s12, %s431_s13  }
 0x1b8 PF: > { %p548_p0 = scmp.ge.s32.totalorder %s677_s23, 2  ;;  %s459_s8 = sand.u32 1, %s657_s18  }
 0x1b9   : > { %s460_s10 = scalar_lea.sflag [#allocation3], %s459_s8 }
 0x1ba   : > { %p545_p1 = pnand %p548_p0, %p759_p8 }
 0x1bc   : > { %p546_p2 = pneg %p545_p1 }
 0x1be   : > { %652 = dma.done.wait (%p546_p2), %s460_s10, 256  }
 0x1bf   : > { %654 = vsyncadd (%p546_p2), %s460_s10, 4294967040  ;;  %s18_s23 = sadd.s32 1, %s677_s23   ;;  %s831_s18 = smov %s661_s19 }
 0x1c0   : > { %p15_p3 = scmp.ge.s32.totalorder %s18_s23, 4   ;;  %s832_s19 = smov %s665_s20 }
 0x1c1   : > { %s833_s20 = smov %s765_s6  ;;  %s834_s21 = smov %s673_s22 }
 0x1c2   : > { %s835_s22 = smov %s837_s26  ;;  %17 = sbr.rel (!%p15_p3) target bundleno = 4 (0x4), region = 75 }
 0x1c7   :  { %465 = vsyncpa [#allocation3], 1 }
 0x1c8   :  { %467 = vsyncpa [#allocation3 + $0x1], 1 }

</bundles_post_ra>
